<compile_context>
chip_gen: v5e
topology: v5e:2x2
jax: 0.10.0
libtpu: 0.0.40
codegen_flags: <defaults>
</compile_context>

<pallas_src>
import math

import jax
import jax.numpy as jnp
from jax import lax
from jax.experimental import pallas as pl
from jax.experimental.pallas import tpu as pltpu

DIM = 32
HEADS = 4
HEAD_DIM = DIM // HEADS
MLP_HIDDEN = int(DIM * 4.0)
LN_EPS = 1e-5            # PyTorch nn.LayerNorm default
INIT_VALUES = 1e-4       # layer-scale init

# row indices inside the packed (8, C) per-channel parameter slab
_LN1_W, _LN1_B, _B_PROJ, _LN2_W, _LN2_B, _B_FC2, _G1, _G2 = range(8)


def _layernorm(h, w, b):
    mu = jnp.mean(h, axis=-1, keepdims=True)
    d = h - mu
    var = jnp.mean(d * d, axis=-1, keepdims=True)
    return d * lax.rsqrt(var + LN_EPS) * w + b


def block_kernel(x_ref, wqkv_t_ref, wproj_ref, wfc1_ref, bfc1_ref, wfc2_ref,
                 slab_ref, out_ref):
    x = x_ref[...]                               # (N, C): one batch's tokens (f32)
    N, C = x.shape
    slab = slab_ref[...]                         # (8, C) packed per-channel vectors

    def row(i):                                  # (1, C) broadcast row of the slab
        return slab[i:i + 1, :]

    # ---- norm1 (f32) ----
    h = _layernorm(x, row(_LN1_W), row(_LN1_B))

    # ---- QKV: single matmul, transpose folded into dot_general ----
    # wqkv_t: (3C, C) bf16; contract its C against h's C -> (3C, N), head-major.
    qkv = lax.dot_general(wqkv_t_ref[...], h.astype(jnp.bfloat16),
                          (((1,), (1,)), ((), ())),
                          preferred_element_type=jnp.float32)         # (3C, N)
    qkv = qkv.reshape(3 * HEADS, HEAD_DIM, N).astype(jnp.bfloat16)    # (3H, D, N)
    q3 = qkv[0 * HEADS:1 * HEADS]                # (H, D, N) leading slices: free
    k3 = qkv[1 * HEADS:2 * HEADS]
    v3 = qkv[2 * HEADS:3 * HEADS]

    # ---- attention (all heads batched, everything stays (H, D, N)) ----
    scale = HEAD_DIM ** -0.5
    s = lax.dot_general(q3, k3, (((1,), (1,)), ((0,), (0,))),
                        preferred_element_type=jnp.float32) * scale   # (H, Nq, Nk)
    s = s - jnp.max(s, axis=-1, keepdims=True)
    p = jnp.exp(s)                                                    # unnormalized
    inv_denom = pl.reciprocal(jnp.sum(p, axis=-1), approx=False)      # (H, Nq)

    # PV lands directly in (H, D, Nq); normalize afterwards (H*N*D multiplies).
    o3 = lax.dot_general(v3, p.astype(jnp.bfloat16),
                         (((2,), (2,)), ((0,), (0,))),
                         preferred_element_type=jnp.float32)          # (H, D, Nq)
    o3 = o3 * inv_denom[:, None, :]

    # (H, D, N) -> (C, N) is a leading-dim merge (layout preserving); the proj
    # contracts dim 0 so the result is already token-major (N, C) -- no .T.
    o_ct = o3.reshape(C, N).astype(jnp.bfloat16)
    a = lax.dot_general(o_ct, wproj_ref[...], (((0,), (0,)), ((), ())),
                        preferred_element_type=jnp.float32) + row(_B_PROJ)

    # x = attn_out ; x = x + drop_path(gamma_1 * x)   (drop_path = Identity)
    x1 = a + row(_G1) * a

    # ---- norm2 + MLP (fc1 -> exact GELU -> fc2) ----
    h2 = _layernorm(x1, row(_LN2_W), row(_LN2_B))
    m = jnp.dot(h2.astype(jnp.bfloat16), wfc1_ref[...],
                preferred_element_type=jnp.float32) + bfc1_ref[...]
    m = 0.5 * m * (1.0 + lax.erf(m * (1.0 / math.sqrt(2.0))))          # exact GELU
    m = jnp.dot(m.astype(jnp.bfloat16), wfc2_ref[...],
                preferred_element_type=jnp.float32) + row(_B_FC2)

    out_ref[...] = x1 + row(_G2) * m


def layer_scale_init_block(x, params):
    (ln1_w, ln1_b, w_qkv, w_proj, b_proj, ln2_w, ln2_b,
     w_fc1, b_fc1, w_fc2, b_fc2, g1, g2) = params
    B, N, C = x.shape

    # Pre-transposed qkv weight -> the kernel's single QKV matmul directly yields
    # a head-major (3H, HEAD_DIM, N) layout.  Weights are bf16 (f32 accumulate).
    w_qkv_t = jnp.transpose(w_qkv).astype(jnp.bfloat16)                # (3C, C)
    w_proj_b = w_proj.astype(jnp.bfloat16)
    w_fc1_b = w_fc1.astype(jnp.bfloat16)
    w_fc2_b = w_fc2.astype(jnp.bfloat16)

    # Pack every (1, C) per-channel vector into one slab: one DMA, one vreg.
    slab = jnp.concatenate(
        [ln1_w, ln1_b, b_proj, ln2_w, ln2_b, b_fc2, g1, g2], axis=0)   # (8, C)

    def const_spec(arr):                       # weights: resident across the grid
        nd = arr.ndim
        return pl.BlockSpec(arr.shape, lambda b, _n=nd: (0,) * _n)

    tok_spec = pl.BlockSpec((None, N, C), lambda b: (b, 0, 0))         # per-batch tile

    # Advisory cost hint so XLA schedules surrounding ops around the call.
    flops = B * (2 * N * C * 3 * C                       # qkv
                 + 2 * 2 * HEADS * N * N * HEAD_DIM      # scores + pv
                 + 2 * N * C * C                         # proj
                 + 2 * 2 * N * C * MLP_HIDDEN)           # fc1 + fc2
    transcendentals = B * (HEADS * N * N + N * MLP_HIDDEN + 2 * N)
    bytes_accessed = (2 * B * N * C * 4                  # activations in + out (f32)
                      + 2 * (w_qkv_t.size + w_proj_b.size
                             + w_fc1_b.size + w_fc2_b.size)            # bf16 weights
                      + 4 * (slab.size + b_fc1.size))

    out = pl.pallas_call(
        block_kernel,
        out_shape=jax.ShapeDtypeStruct((B, N, C), jnp.float32),
        grid=(B,),                                       # batch steps are independent
        in_specs=[tok_spec,
                  const_spec(w_qkv_t), const_spec(w_proj_b), const_spec(w_fc1_b),
                  const_spec(b_fc1), const_spec(w_fc2_b), const_spec(slab)],
        out_specs=tok_spec,
        compiler_params=pltpu.CompilerParams(
            dimension_semantics=("parallel",),           # megacore / v7x 2-TC split
            vmem_limit_bytes=32 * 1024 * 1024),
        cost_estimate=pl.CostEstimate(flops=flops,
                                      transcendentals=transcendentals,
                                      bytes_accessed=bytes_accessed),
    )(x, w_qkv_t, w_proj_b, w_fc1_b, b_fc1, w_fc2_b, slab)

    return out


if __name__ == "__main__":
    B, N, C = 2, 8, DIM
    key = jax.random.PRNGKey(0)
    keys = jax.random.split(key, 6)

    x = jax.random.normal(keys[0], (B, N, C), jnp.float32)

    w_std = 0.02
    ln1_w = jnp.ones((1, C), jnp.float32)
    ln1_b = jnp.zeros((1, C), jnp.float32)
    w_qkv = w_std * jax.random.normal(keys[1], (C, 3 * C), jnp.float32)   # qkv_bias=False
    w_proj = w_std * jax.random.normal(keys[2], (C, C), jnp.float32)
    b_proj = jnp.zeros((1, C), jnp.float32)
    ln2_w = jnp.ones((1, C), jnp.float32)
    ln2_b = jnp.zeros((1, C), jnp.float32)
    w_fc1 = w_std * jax.random.normal(keys[3], (C, MLP_HIDDEN), jnp.float32)
    b_fc1 = jnp.zeros((1, MLP_HIDDEN), jnp.float32)
    w_fc2 = w_std * jax.random.normal(keys[4], (MLP_HIDDEN, C), jnp.float32)
    b_fc2 = jnp.zeros((1, C), jnp.float32)
    g1 = jnp.full((1, C), INIT_VALUES, jnp.float32)
    g2 = jnp.full((1, C), INIT_VALUES, jnp.float32)

    params = [ln1_w, ln1_b, w_qkv, w_proj, b_proj, ln2_w, ln2_b,
              w_fc1, b_fc1, w_fc2, b_fc2, g1, g2]

    out = jax.block_until_ready(layer_scale_init_block(x, params))

    # pure-JAX f32 reference for a sanity check
    def ref_forward(x):
        def ln(h, w, b):
            mu = h.mean(-1, keepdims=True)
            d = h - mu
            var = (d * d).mean(-1, keepdims=True)
            return d / jnp.sqrt(var + LN_EPS) * w + b

        h = ln(x, ln1_w, ln1_b)
        y = h @ w_qkv
        q = y[..., :C].reshape(B, N, HEADS, HEAD_DIM).transpose(0, 2, 1, 3)
        k = y[..., C:2 * C].reshape(B, N, HEADS, HEAD_DIM).transpose(0, 2, 1, 3)
        v = y[..., 2 * C:].reshape(B, N, HEADS, HEAD_DIM).transpose(0, 2, 1, 3)
        s = (q @ k.transpose(0, 1, 3, 2)) * (HEAD_DIM ** -0.5)
        p = jax.nn.softmax(s, axis=-1)
        o = (p @ v).transpose(0, 2, 1, 3).reshape(B, N, C)
        a = o @ w_proj + b_proj
        x1 = a + g1 * a
        h2 = ln(x1, ln2_w, ln2_b)
        m = jax.nn.gelu(h2 @ w_fc1 + b_fc1, approximate=False)
        m = m @ w_fc2 + b_fc2
        return x1 + g2 * m

    ref = ref_forward(x)
    assert jnp.allclose(out, ref, atol=1e-3, rtol=1e-3), float(jnp.abs(out - ref).max())
    print("KERNEL_OK")
</pallas_src>

<mosaic_0001>
module attributes {stable_mosaic.version = 11 : i64} {
  func.func @block_kernel(%arg0: i32, %arg1: memref<1x8x32xf32, #tpu.memory_space<vmem>>, %arg2: memref<96x32xbf16, #tpu.memory_space<vmem>>, %arg3: memref<32x32xbf16, #tpu.memory_space<vmem>>, %arg4: memref<32x128xbf16, #tpu.memory_space<vmem>>, %arg5: memref<1x128xf32, #tpu.memory_space<vmem>>, %arg6: memref<128x32xbf16, #tpu.memory_space<vmem>>, %arg7: memref<8x32xf32, #tpu.memory_space<vmem>>, %arg8: memref<1x8x32xf32, #tpu.memory_space<vmem>>) attributes {dimension_semantics = [#tpu.dimension_semantics<parallel>], iteration_bounds = array<i64: 2>, scalar_prefetch = 0 : i64, scratch_operands = 0 : i64, tpu.core_type = #tpu.core_type<tc>, window_params = [{transform_indices = @transform_0, window_bounds = array<i64: 1, 8, 32>}, {pipeline_mode = #tpu.pipeline_mode<synchronous>, transform_indices = @transform_1, window_bounds = array<i64: 96, 32>}, {pipeline_mode = #tpu.pipeline_mode<synchronous>, transform_indices = @transform_2, window_bounds = array<i64: 32, 32>}, {pipeline_mode = #tpu.pipeline_mode<synchronous>, transform_indices = @transform_3, window_bounds = array<i64: 32, 128>}, {pipeline_mode = #tpu.pipeline_mode<synchronous>, transform_indices = @transform_4, window_bounds = array<i64: 1, 128>}, {pipeline_mode = #tpu.pipeline_mode<synchronous>, transform_indices = @transform_5, window_bounds = array<i64: 128, 32>}, {pipeline_mode = #tpu.pipeline_mode<synchronous>, transform_indices = @transform_6, window_bounds = array<i64: 8, 32>}, {transform_indices = @transform_7, window_bounds = array<i64: 1, 8, 32>}]} {
    %c0 = arith.constant 0 : index
    %c0_0 = arith.constant 0 : index
    %c0_1 = arith.constant 0 : index
    %0 = vector.load %arg1[%c0, %c0_0, %c0_1] : memref<1x8x32xf32, #tpu.memory_space<vmem>>, vector<1x8x32xf32>
    %1 = vector.shape_cast %0 : vector<1x8x32xf32> to vector<8x32xf32>
    %c0_2 = arith.constant 0 : index
    %c0_3 = arith.constant 0 : index
    %2 = vector.load %arg7[%c0_2, %c0_3] : memref<8x32xf32, #tpu.memory_space<vmem>>, vector<8x32xf32>
    %3 = vector.extract_strided_slice %2 {offsets = [0, 0], sizes = [1, 32], strides = [1, 1]} : vector<8x32xf32> to vector<1x32xf32>
    %4 = vector.extract_strided_slice %2 {offsets = [1, 0], sizes = [1, 32], strides = [1, 1]} : vector<8x32xf32> to vector<1x32xf32>
    %cst = arith.constant dense<0.000000e+00> : vector<8xf32>
    %5 = vector.multi_reduction <add>, %1, %cst [1] : vector<8x32xf32> to vector<8xf32>
    %6 = vector.shape_cast %5 : vector<8xf32> to vector<8x1xf32>
    %cst_4 = arith.constant 3.200000e+01 : f32
    %7 = vector.broadcast %cst_4 : f32 to vector<8x1xf32>
    %8 = arith.divf %6, %7 : vector<8x1xf32>
    %9 = vector.broadcast %8 : vector<8x1xf32> to vector<8x32xf32>
    %10 = arith.subf %1, %9 : vector<8x32xf32>
    %11 = arith.mulf %10, %10 : vector<8x32xf32>
    %cst_5 = arith.constant dense<0.000000e+00> : vector<8xf32>
    %12 = vector.multi_reduction <add>, %11, %cst_5 [1] : vector<8x32xf32> to vector<8xf32>
    %13 = vector.shape_cast %12 : vector<8xf32> to vector<8x1xf32>
    %cst_6 = arith.constant 3.200000e+01 : f32
    %14 = vector.broadcast %cst_6 : f32 to vector<8x1xf32>
    %15 = arith.divf %13, %14 : vector<8x1xf32>
    %cst_7 = arith.constant 9.99999974E-6 : f32
    %16 = vector.broadcast %cst_7 : f32 to vector<8x1xf32>
    %17 = arith.addf %15, %16 : vector<8x1xf32>
    %18 = math.rsqrt %17 : vector<8x1xf32>
    %19 = vector.broadcast %18 : vector<8x1xf32> to vector<8x32xf32>
    %20 = arith.mulf %10, %19 : vector<8x32xf32>
    %21 = vector.broadcast %3 : vector<1x32xf32> to vector<8x32xf32>
    %22 = arith.mulf %20, %21 : vector<8x32xf32>
    %23 = vector.broadcast %4 : vector<1x32xf32> to vector<8x32xf32>
    %24 = arith.addf %22, %23 : vector<8x32xf32>
    %c0_8 = arith.constant 0 : index
    %c0_9 = arith.constant 0 : index
    %25 = vector.load %arg2[%c0_8, %c0_9] : memref<96x32xbf16, #tpu.memory_space<vmem>>, vector<96x32xbf16>
    %26 = arith.truncf %24 : vector<8x32xf32> to vector<8x32xbf16>
    %cst_10 = arith.constant dense<0.000000e+00> : vector<96x8xf32>
    %27 = tpu.matmul %25, %26, %cst_10 {dimension_numbers = #tpu.dot_dimension_numbers<[1], [1], [0], [0], [0, 0, 1, 0], [], []>} : vector<96x32xbf16>, vector<8x32xbf16>, vector<96x8xf32> -> vector<96x8xf32>
    %28 = vector.shape_cast %27 : vector<96x8xf32> to vector<12x8x8xf32>
    %29 = arith.truncf %28 : vector<12x8x8xf32> to vector<12x8x8xbf16>
    %30 = vector.extract_strided_slice %29 {offsets = [0, 0, 0], sizes = [4, 8, 8], strides = [1, 1, 1]} : vector<12x8x8xbf16> to vector<4x8x8xbf16>
    %31 = vector.extract_strided_slice %29 {offsets = [4, 0, 0], sizes = [4, 8, 8], strides = [1, 1, 1]} : vector<12x8x8xbf16> to vector<4x8x8xbf16>
    %32 = vector.extract_strided_slice %29 {offsets = [8, 0, 0], sizes = [4, 8, 8], strides = [1, 1, 1]} : vector<12x8x8xbf16> to vector<4x8x8xbf16>
    %cst_11 = arith.constant dense<0.000000e+00> : vector<4x8x8xf32>
    %33 = tpu.matmul %30, %31, %cst_11 {dimension_numbers = #tpu.dot_dimension_numbers<[1], [1], [2], [2], [0, 0, 0, 2, 1, 2], [0], [0]>} : vector<4x8x8xbf16>, vector<4x8x8xbf16>, vector<4x8x8xf32> -> vector<4x8x8xf32>
    %cst_12 = arith.constant 0.353553385 : f32
    %34 = vector.broadcast %cst_12 : f32 to vector<4x8x8xf32>
    %35 = arith.mulf %33, %34 : vector<4x8x8xf32>
    %cst_13 = arith.constant dense<0xFF800000> : vector<4x8xf32>
    %36 = vector.multi_reduction <maximumf>, %35, %cst_13 [2] : vector<4x8x8xf32> to vector<4x8xf32>
    %37 = vector.shape_cast %36 : vector<4x8xf32> to vector<4x8x1xf32>
    %38 = vector.broadcast %37 : vector<4x8x1xf32> to vector<4x8x8xf32>
    %39 = arith.subf %35, %38 : vector<4x8x8xf32>
    %40 = math.exp %39 : vector<4x8x8xf32>
    %cst_14 = arith.constant dense<0.000000e+00> : vector<4x8xf32>
    %41 = vector.multi_reduction <add>, %40, %cst_14 [2] : vector<4x8x8xf32> to vector<4x8xf32>
    %42 = tpu.reciprocal %41 : vector<4x8xf32> -> vector<4x8xf32>
    %43 = arith.truncf %40 : vector<4x8x8xf32> to vector<4x8x8xbf16>
    %cst_15 = arith.constant dense<0.000000e+00> : vector<4x8x8xf32>
    %44 = tpu.matmul %32, %43, %cst_15 {dimension_numbers = #tpu.dot_dimension_numbers<[2], [2], [1], [1], [0, 0, 0, 1, 1, 1], [0], [0]>} : vector<4x8x8xbf16>, vector<4x8x8xbf16>, vector<4x8x8xf32> -> vector<4x8x8xf32>
    %45 = vector.shape_cast %42 : vector<4x8xf32> to vector<4x1x8xf32>
    %46 = vector.broadcast %45 : vector<4x1x8xf32> to vector<4x8x8xf32>
    %47 = arith.mulf %44, %46 : vector<4x8x8xf32>
    %48 = vector.shape_cast %47 : vector<4x8x8xf32> to vector<32x8xf32>
    %49 = arith.truncf %48 : vector<32x8xf32> to vector<32x8xbf16>
    %c0_16 = arith.constant 0 : index
    %c0_17 = arith.constant 0 : index
    %50 = vector.load %arg3[%c0_16, %c0_17] : memref<32x32xbf16, #tpu.memory_space<vmem>>, vector<32x32xbf16>
    %cst_18 = arith.constant dense<0.000000e+00> : vector<8x32xf32>
    %51 = tpu.matmul %49, %50, %cst_18 {dimension_numbers = #tpu.dot_dimension_numbers<[0], [0], [1], [1], [0, 1, 1, 1], [], []>} : vector<32x8xbf16>, vector<32x32xbf16>, vector<8x32xf32> -> vector<8x32xf32>
    %52 = vector.extract_strided_slice %2 {offsets = [2, 0], sizes = [1, 32], strides = [1, 1]} : vector<8x32xf32> to vector<1x32xf32>
    %53 = vector.broadcast %52 : vector<1x32xf32> to vector<8x32xf32>
    %54 = arith.addf %51, %53 : vector<8x32xf32>
    %55 = vector.extract_strided_slice %2 {offsets = [6, 0], sizes = [1, 32], strides = [1, 1]} : vector<8x32xf32> to vector<1x32xf32>
    %56 = vector.broadcast %55 : vector<1x32xf32> to vector<8x32xf32>
    %57 = arith.mulf %56, %54 : vector<8x32xf32>
    %58 = arith.addf %54, %57 : vector<8x32xf32>
    %59 = vector.extract_strided_slice %2 {offsets = [3, 0], sizes = [1, 32], strides = [1, 1]} : vector<8x32xf32> to vector<1x32xf32>
    %60 = vector.extract_strided_slice %2 {offsets = [4, 0], sizes = [1, 32], strides = [1, 1]} : vector<8x32xf32> to vector<1x32xf32>
    %cst_19 = arith.constant dense<0.000000e+00> : vector<8xf32>
    %61 = vector.multi_reduction <add>, %58, %cst_19 [1] : vector<8x32xf32> to vector<8xf32>
    %62 = vector.shape_cast %61 : vector<8xf32> to vector<8x1xf32>
    %cst_20 = arith.constant 3.200000e+01 : f32
    %63 = vector.broadcast %cst_20 : f32 to vector<8x1xf32>
    %64 = arith.divf %62, %63 : vector<8x1xf32>
    %65 = vector.broadcast %64 : vector<8x1xf32> to vector<8x32xf32>
    %66 = arith.subf %58, %65 : vector<8x32xf32>
    %67 = arith.mulf %66, %66 : vector<8x32xf32>
    %cst_21 = arith.constant dense<0.000000e+00> : vector<8xf32>
    %68 = vector.multi_reduction <add>, %67, %cst_21 [1] : vector<8x32xf32> to vector<8xf32>
    %69 = vector.shape_cast %68 : vector<8xf32> to vector<8x1xf32>
    %cst_22 = arith.constant 3.200000e+01 : f32
    %70 = vector.broadcast %cst_22 : f32 to vector<8x1xf32>
    %71 = arith.divf %69, %70 : vector<8x1xf32>
    %cst_23 = arith.constant 9.99999974E-6 : f32
    %72 = vector.broadcast %cst_23 : f32 to vector<8x1xf32>
    %73 = arith.addf %71, %72 : vector<8x1xf32>
    %74 = math.rsqrt %73 : vector<8x1xf32>
    %75 = vector.broadcast %74 : vector<8x1xf32> to vector<8x32xf32>
    %76 = arith.mulf %66, %75 : vector<8x32xf32>
    %77 = vector.broadcast %59 : vector<1x32xf32> to vector<8x32xf32>
    %78 = arith.mulf %76, %77 : vector<8x32xf32>
    %79 = vector.broadcast %60 : vector<1x32xf32> to vector<8x32xf32>
    %80 = arith.addf %78, %79 : vector<8x32xf32>
    %81 = arith.truncf %80 : vector<8x32xf32> to vector<8x32xbf16>
    %c0_24 = arith.constant 0 : index
    %c0_25 = arith.constant 0 : index
    %82 = vector.load %arg4[%c0_24, %c0_25] : memref<32x128xbf16, #tpu.memory_space<vmem>>, vector<32x128xbf16>
    %cst_26 = arith.constant dense<0.000000e+00> : vector<8x128xf32>
    %83 = tpu.matmul %81, %82, %cst_26 {dimension_numbers = #tpu.dot_dimension_numbers<[1], [0], [0], [1], [0, 0, 1, 1], [], []>} : vector<8x32xbf16>, vector<32x128xbf16>, vector<8x128xf32> -> vector<8x128xf32>
    %c0_27 = arith.constant 0 : index
    %c0_28 = arith.constant 0 : index
    %84 = vector.load %arg5[%c0_27, %c0_28] : memref<1x128xf32, #tpu.memory_space<vmem>>, vector<1x128xf32>
    %85 = vector.broadcast %84 : vector<1x128xf32> to vector<8x128xf32>
    %86 = arith.addf %83, %85 : vector<8x128xf32>
    %cst_29 = arith.constant 5.000000e-01 : f32
    %87 = vector.broadcast %cst_29 : f32 to vector<8x128xf32>
    %88 = arith.mulf %87, %86 : vector<8x128xf32>
    %cst_30 = arith.constant 0.707106769 : f32
    %89 = vector.broadcast %cst_30 : f32 to vector<8x128xf32>
    %90 = arith.mulf %86, %89 : vector<8x128xf32>
    %91 = math.erf %90 : vector<8x128xf32>
    %cst_31 = arith.constant 1.000000e+00 : f32
    %92 = vector.broadcast %cst_31 : f32 to vector<8x128xf32>
    %93 = arith.addf %92, %91 : vector<8x128xf32>
    %94 = arith.mulf %88, %93 : vector<8x128xf32>
    %95 = arith.truncf %94 : vector<8x128xf32> to vector<8x128xbf16>
    %c0_32 = arith.constant 0 : index
    %c0_33 = arith.constant 0 : index
    %96 = vector.load %arg6[%c0_32, %c0_33] : memref<128x32xbf16, #tpu.memory_space<vmem>>, vector<128x32xbf16>
    %cst_34 = arith.constant dense<0.000000e+00> : vector<8x32xf32>
    %97 = tpu.matmul %95, %96, %cst_34 {dimension_numbers = #tpu.dot_dimension_numbers<[1], [0], [0], [1], [0, 0, 1, 1], [], []>} : vector<8x128xbf16>, vector<128x32xbf16>, vector<8x32xf32> -> vector<8x32xf32>
    %98 = vector.extract_strided_slice %2 {offsets = [5, 0], sizes = [1, 32], strides = [1, 1]} : vector<8x32xf32> to vector<1x32xf32>
    %99 = vector.broadcast %98 : vector<1x32xf32> to vector<8x32xf32>
    %100 = arith.addf %97, %99 : vector<8x32xf32>
    %101 = vector.extract_strided_slice %2 {offsets = [7, 0], sizes = [1, 32], strides = [1, 1]} : vector<8x32xf32> to vector<1x32xf32>
    %102 = vector.broadcast %101 : vector<1x32xf32> to vector<8x32xf32>
    %103 = arith.mulf %102, %100 : vector<8x32xf32>
    %104 = arith.addf %58, %103 : vector<8x32xf32>
    %c0_35 = arith.constant 0 : index
    %c0_36 = arith.constant 0 : index
    %c0_37 = arith.constant 0 : index
    %105 = vector.load %arg8[%c0_35, %c0_36, %c0_37] : memref<1x8x32xf32, #tpu.memory_space<vmem>>, vector<1x8x32xf32>
    %106 = vector.shape_cast %105 : vector<1x8x32xf32> to vector<8x32xf32>
    %107 = vector.shape_cast %104 : vector<8x32xf32> to vector<1x8x32xf32>
    tpu.vector_store %arg8[%c0_35, %c0_36, %c0_37], %107 {strides = array<i32>} : memref<1x8x32xf32, #tpu.memory_space<vmem>>, vector<1x8x32xf32>,
    return
  }
  func.func @transform_0(%arg0: i32) -> (i32, i32, i32) {
    %c0_i32 = arith.constant 0 : i32
    %c0_i32_0 = arith.constant 0 : i32
    %c0_i32_1 = arith.constant 0 : i32
    return %arg0, %c0_i32, %c0_i32_0 : i32, i32, i32
  }
  func.func @transform_1(%arg0: i32) -> (i32, i32) {
    %c0_i32 = arith.constant 0 : i32
    %c0_i32_0 = arith.constant 0 : i32
    %c0_i32_1 = arith.constant 0 : i32
    return %c0_i32, %c0_i32_0 : i32, i32
  }
  func.func @transform_2(%arg0: i32) -> (i32, i32) {
    %c0_i32 = arith.constant 0 : i32
    %c0_i32_0 = arith.constant 0 : i32
    %c0_i32_1 = arith.constant 0 : i32
    return %c0_i32, %c0_i32_0 : i32, i32
  }
  func.func @transform_3(%arg0: i32) -> (i32, i32) {
    %c0_i32 = arith.constant 0 : i32
    %c0_i32_0 = arith.constant 0 : i32
    %c0_i32_1 = arith.constant 0 : i32
    return %c0_i32, %c0_i32_0 : i32, i32
  }
  func.func @transform_4(%arg0: i32) -> (i32, i32) {
    %c0_i32 = arith.constant 0 : i32
    %c0_i32_0 = arith.constant 0 : i32
    %c0_i32_1 = arith.constant 0 : i32
    return %c0_i32, %c0_i32_0 : i32, i32
  }
  func.func @transform_5(%arg0: i32) -> (i32, i32) {
    %c0_i32 = arith.constant 0 : i32
    %c0_i32_0 = arith.constant 0 : i32
    %c0_i32_1 = arith.constant 0 : i32
    return %c0_i32, %c0_i32_0 : i32, i32
  }
  func.func @transform_6(%arg0: i32) -> (i32, i32) {
    %c0_i32 = arith.constant 0 : i32
    %c0_i32_0 = arith.constant 0 : i32
    %c0_i32_1 = arith.constant 0 : i32
    return %c0_i32, %c0_i32_0 : i32, i32
  }
  func.func @transform_7(%arg0: i32) -> (i32, i32, i32) {
    %c0_i32 = arith.constant 0 : i32
    %c0_i32_0 = arith.constant 0 : i32
    %c0_i32_1 = arith.constant 0 : i32
    return %arg0, %c0_i32, %c0_i32_0 : i32, i32, i32
  }
}

</mosaic_0001>

<bundles_post_ra>
// kernel: tpu_custom_call.1
= control target key start
LH: loop header
LB: loop body
LE: loop exit
PB: predicated region body
PF: predicated region fallthrough
CT: control target
= control target key end

     0   :  { %12 = vsyncpa [#allocation3], 0  ;;  %s1639_s0 = inlined_call_operand.vmem [shape: f32[2,8,32], index: 0, kind: input, shape index: {}]   ;;  %s1640_s1 = inlined_call_operand.vmem [shape: bf16[96,32], index: 1, kind: input, shape index: {}]   ;;  %s1641_s2 = inlined_call_operand.vmem [shape: bf16[32,32], index: 2, kind: input, shape index: {}]   ;;  %s1642_s3 = inlined_call_operand.vmem [shape: bf16[32,128], index: 3, kind: input, shape index: {}]   ;;  %s1643_s4 = inlined_call_operand.vmem [shape: f32[1,128], index: 4, kind: input, shape index: {}]   ;;  %s1644_s5 = inlined_call_operand.vmem [shape: bf16[128,32], index: 5, kind: input, shape index: {}]   ;;  %s1645_s6 = inlined_call_operand.vmem [shape: f32[8,32], index: 6, kind: input, shape index: {}]   ;;  %s1646_s7 = inlined_call_operand.hbm [shape: f32[2,8,32], index: 7, kind: output, shape index: {}]  }
   0x1   :  { %14 = vsyncpa [#allocation3 + $0x1], 0  ;;  %s1406_s24 = smov 0   ;;  %s1408_s25 = smov 0  }
   0x2   :  { %s1410_s26 = smov 0   ;;  %s1412_s27 = smov 0  }
   0x3 LB: > { %s1427_s28 = sadd.s32 4294967295, %s1363_s27   ;;  %s1111_s29 = sadd.s32 4294967294, %s1363_s27   ;;  %s1363_s27 = sphi %s1412_s27, %s1654_s27   ;;  %s1359_s26 = sphi %s1410_s26, %s1653_s26   ;;  %s1355_s25 = sphi %s1408_s25, %s1652_s25   ;;  %s1351_s24 = sphi %s1406_s24, %s1651_s24  }
   0x4   : > { %s1431_s30 = sadd.s32 1, %s1363_s27   ;;  %s179_s8 = sadd.s32 1, %s1359_s26 }
   0x5   : > { %s176_s9 = ssub.s32 %s1363_s27, %s1431_s30  ;;  %p189_p0 = scmp.ne.s32.totalorder %s1359_s26, %s1355_s25 }
   0x6   : > { %p177_p1 = scmp.eq.s32.totalorder %s176_s9, 0  ;;  %p190_p2 = scmp.eq.s32.totalorder %s1427_s28, 1 }
   0x7   : > { %p195_p3 = scmp.ne.s32.totalorder %s1355_s25, %s1351_s24  ;;  %p196_p4 = scmp.eq.s32.totalorder %s1111_s29, 1 }
   0x8   : > { %s1442_s10 = scalar_select %p177_p1, %s1359_s26, %s179_s8  }
   0x9   : > { %p1444_p5 = por %p190_p2, %p189_p0  ;;  %p1448_p6 = por %p196_p4, %p195_p3 }
   0xa   : > { %p1114_p7 = scmp.ge.s32.totalorder %s1363_s27, 1  ;;  %p239_p8 = scmp.lt.s32.totalorder %s1363_s27, 3 }
   0xc   : > { %p240_p9 = pnand %p1114_p7, %p239_p8 }
   0xd   : > { %p270_p10 = scmp.lt.s32.totalorder (!%p240_p9), %s1427_s28, 1  ;;  %s267_s16 = sand.u32 (!%p240_p9), 1, %s1355_s25  }
   0xe   : > { %243 = sbr.rel (%p240_p9) target bundleno = 1920 (0x780), region = 48  ;;  %s1207_s18 = sshll.u32 (!%p240_p9), %s1427_s28, 3 }
   0xf   : > { %s1047_s21 = scalar_lea.hbm (!%p240_p9), %s1646_s7, %s1207_s18  ;;  %s1321_s15 = scalar_lea.hbm (!%p240_p9), %s1646_s7, 16 }
  0x10   : > { %s1051_s29 = sshll.u32 (!%p240_p9), %s1047_s21, 4  ;;  %s1052_s29 = int_to_ptr.hbm [resolvable:$true] %s1051_s29 }
  0x11   : > { %s1315_s8 = sshra.s32 (!%p240_p9), %s1052_s29, 4  ;;  %s1316_s8 = int_to_ptr.hbm [resolvable:$true] %s1315_s8 }
  0x12   : > { %s1317_s9 = scalar_lea.hbm (!%p240_p9), %s1316_s8, 8  ;;  %p1322_p0 = scmp.lt.s32.totalorder (!%p240_p9), %s1316_s8, %s1646_s7 }
  0x13   : > { %s271_s13 = scalar_select %p270_p10, %s1427_s28, 1  ;;  %vm277_vm0 = vcmask 261120   ;;  %v1365_v2 = vmov 32.0   ;;  %v1468_v22 = vld [vmem:[%s1645_s6] sm:$0xff]  ;;  %v1211_v33 = vld [vmem:[%s1640_s1 + $0x8] sm:$0xff]  ;;  %v1212_v34 = vld [vmem:[%s1640_s1 + $0x10] sm:$0xff] }
  0x14   : > { %1277 = vrcp.f32 %v1365_v2  ;;  %v307_v24 = vperm.slane %v1468_v22, 0  ;;  %v309_v27 = vperm.slane %v1468_v22, 1  ;;  %v1210_v32 = vld [vmem:[%s1640_s1] sm:$0xff]  ;;  %v1213_v39 = vld [vmem:[%s1640_s1 + $0x18] sm:$0xff]  ;;  %vm446_vm5 = vcmask 1043456   ;;  %v1215_v50 = vld [vmem:[%s1640_s1 + $0x28] sm:$0xff]  ;;  %p1318_p11 = scmp.ne.s32.totalorder %s1316_s8, %s1317_s9  ;;  %p1323_p1 = scmp.lt.s32.totalorder %s1321_s15, %s1317_s9 }
  0x15   : > { %s1116_s14 = sshll.u32 %s271_s13, 3  ;;  %vm442_vm6 = vcmask 64512   ;;  %v1214_v61 = vld [vmem:[%s1640_s1 + $0x20] sm:$0xff]  ;;  %s1037_s28 = scalar_lea.sflag [#allocation3], %s267_s16 }
  0x16   : > { %s273_s17 = scalar_lea.vmem %s1639_s0, %s1116_s14  ;;  %p1319_p12 = pnand %p1318_p11, %p1444_p5 }
  0x17   : > { %v275_v0 = vld [vmem:[%s273_s17] sm:$0xff]  ;;  %s1115_s17 = sshll.u32 %s267_s16, 3  ;;  %p1324_p2 = por %p1323_p1, %p1322_p0 }
  0x18   : > { %v278_v1 = vsel %vm277_vm0, %v275_v0, 0.0  ;;  %s269_s22 = scalar_lea.vmem [#allocation2], %s1115_s17  ;;  %p1320_p13 = pneg %p1319_p12 }
  0x19   : > { %279 = vadd.xlane.f32.xlu0 %v278_v1  ;;  %s1049_s23 = sshll.u32 %s269_s22, 4  ;;  %s1050_s23 = int_to_ptr.vmem [resolvable:$true] %s1049_s23 }
  0x1a   : > { %v1278_v3 = vpop.eup %1277  ;;  %p1325_p3 = pnand %p1324_p2, %p1320_p13 }
  0x1b   : > { %v282_v4 = vmul.f32 32.0, %v1278_v3  ;;  %vm286_vm1 = vweird.f32 %v1278_v3 }
  0x1d   : > { %v283_v5 = vsub.f32 1.0, %v282_v4 }
  0x1f   : > { %v284_v6 = vmul.f32 %v1278_v3, %v283_v5 }
  0x21   : > { %v285_v7 = vadd.f32 %v1278_v3, %v284_v6 }
  0x23   : > { %v1460_v8 = vsel %vm286_vm1, %v1278_v3, %v285_v7 }
  0x8c   : > { %v280_v9 = vpop.xlane.xlu0 %279 }
  0x8d   : > { %v288_v10 = vmul.f32 %v1460_v8, %v280_v9 }
  0x8f   : > { %v289_v11 = vsub.f32 %v275_v0, %v288_v10 }
  0x91   : > { %v290_v12 = vmul.f32 %v289_v11, %v289_v11 }
  0x93   : > { %v291_v13 = vsel %vm277_vm0, %v290_v12, 0.0 }
  0x94   : > { %292 = vadd.xlane.f32.xlu0 %v291_v13 }
 0x107   : > { %v293_v14 = vpop.xlane.xlu0 %292 }
 0x108   : > { %v294_v15 = vmul.f32 %v293_v14, %v1460_v8 }
 0x10a   : > { %v295_v16 = vadd.f32 1e-05, %v294_v15 }
 0x10c   : > { %1279 = vrsqrt.f32 %v295_v16  ;;  %vm302_vm3 = vweird.f32 %v295_v16 }
 0x112   : > { %v1280_v17 = vpop.eup %1279 }
 0x113   : > { %v297_v18 = vmul.f32 %v1280_v17, %v295_v16  ;;  %vm303_vm2 = vweird.f32 %v1280_v17 }
 0x114   : > { %vm304_vm4 = vmor %vm302_vm3, %vm303_vm2 }
 0x115   : > { %v298_v19 = vmul.f32 %v1280_v17, %v297_v18 }
 0x117   : > { %v299_v20 = vmul.f32 0.5, %v298_v19 }
 0x119   : > { %v300_v21 = vsub.f32 1.5, %v299_v20 }
 0x11b   : > { %v301_v23 = vmul.f32 %v1280_v17, %v300_v21 }
 0x11d   : > { %v305_v25 = vsel %vm304_vm4, %v1280_v17, %v301_v23 }
 0x11e   : > { %v306_v26 = vmul.f32 %v305_v25, %v289_v11 }
 0x120   : > { %v308_v28 = vmul.f32 %v307_v24, %v306_v26 }
 0x122   : > { %v310_v29 = vadd.f32 %v309_v27, %v308_v28 }
 0x124   : > { %v323_v30 = vpack.c.bf16 %v310_v29, %v310_v29 }
 0x126   : > { %v373_v31 = vsel %vm277_vm0, %v323_v30, 0 }
 0x127   : > { %382 = vmatpush.bf16.xpose.msra.mxu0 %v373_v31  ;;  %1228 = vmatpush.bf16.xpose.msra.mxu3 %v373_v31 }
 0x12e   : > { %1141 = vmatmul.msk.bf16.vlgmr.msra.gmra.mxu0 %vm277_vm0, %v1210_v32  ;;  %1146 = vmatmul.msk.bf16.vlgmr.msra.gmra.mxu3 %vm277_vm0, %v1215_v50 }
 0x13e   : > { %1142 = vmatmul.msk.bf16.gmra.mxu0 %vm277_vm0, %v1211_v33 }
 0x14e   : > { %1143 = vmatmul.msk.bf16.gmra.mxu0 %vm277_vm0, %v1212_v34 }
 0x15e   : > { %1144 = vmatmul.msk.bf16.gmra.mxu0 %vm277_vm0, %v1213_v39 }
 0x16e   : > { %1145 = vmatmul.msk.bf16.gmra.mxu0 %vm277_vm0, %v1214_v61 }
 0x1ab   : > { %v384_v35 = vpop.f32.mrf.mxu0 }
 0x1ac   : > { %v414_v37 = vpack.c.bf16 %v384_v35, %v384_v35 }
 0x1b1   : > { %v1505_v0 = vpop.f32.mrf.mxu3 }
 0x1b2   : > { %v424_v50 = vpack.c.bf16 %v1505_v0, %v1505_v0 }
 0x1b3   : > { %v386_v36 = vpop.f32.mrf.mxu0 }
 0x1b4   : > { %v415_v38 = vpack.c.bf16 %v386_v36, %v386_v36 }
 0x1b6   : > { %1270 = vxpose.binary.xlu1.c.b16.start.end [1/2] (short) (narrow) %v415_v38, %v414_v37, 16 }
 0x1b9   : > { %v1508_v3 = vpop.f32.mrf.mxu3 }
 0x1bb   : > { %v389_v40 = vpop.f32.mrf.mxu0 }
 0x1bc   : > { %v416_v42 = vpack.c.bf16 %v389_v40, %v389_v40 }
 0x1c3   : > { %v391_v41 = vpop.f32.mrf.mxu0 }
 0x1c4   : > { %v417_v43 = vpack.c.bf16 %v391_v41, %v391_v41 }
 0x1c6   : > { %1273 = vxpose.binary.xlu1.c.b16.start.end [1/2] (short) (narrow) %v417_v43, %v416_v42, 16 }
 0x1cb   : > { %v394_v44 = vpop.f32.mrf.mxu0 }
 0x1cc   : > { %v418_v45 = vpack.c.bf16 %v394_v44, %v394_v44 }
 0x1ce   : > { %v448_v46 = vsel %vm446_vm5, %v418_v45, 0 }
 0x1cf   : > { %457 = vmatpush.bf16.msra.mxu1 %v448_v46 }
 0x1d3   : > { %v396_v47 = vpop.f32.mrf.mxu0 }
 0x1d4   : > { %v419_v48 = vpack.c.bf16 %v396_v47, %v396_v47 }
 0x1d6   : > { %v483_v49 = vsel %vm446_vm5, %v419_v48, 0 }
 0x1d7   : > { %492 = vmatpush.bf16.msra.mxu2 %v483_v49 }
 0x1db   : > { %v399_v51 = vpop.f32.mrf.mxu0 }
 0x1dc   : > { %v420_v52 = vpack.c.bf16 %v399_v51, %v399_v51  ;;  %v425_v51 = vpack.c.bf16 %v1508_v3, %v1508_v3  ;;  %v1217_v3 = vld [vmem:[%s1641_s2 + $0x8] sm:$0xff] }
 0x1de   : > { %v518_v54 = vsel %vm446_vm5, %v420_v52, 0 }
 0x1df   : > { %527 = vmatpush.bf16.msrb.mxu3 %v518_v54 }
 0x1e3   : > { %v401_v53 = vpop.f32.mrf.mxu0 }
 0x1e4   : > { %v421_v55 = vpack.c.bf16 %v401_v53, %v401_v53 }
 0x1e6   : > { %v553_v56 = vsel %vm446_vm5, %v421_v55, 0 }
 0x1e7   : > { %562 = vmatpush.bf16.msrb.mxu1 %v553_v56 }
 0x1eb   : > { %v404_v28 = vpop.f32.mrf.mxu0 }
 0x1ec   : > { %v422_v29 = vpack.c.bf16 %v404_v28, %v404_v28 }
 0x1f3   : > { %v406_v40 = vpop.f32.mrf.mxu0 }
 0x1f4   : > { %v423_v42 = vpack.c.bf16 %v406_v40, %v406_v40 }
 0x262   : > { %v1271_v57 = vpop.trf.xlu1 }
 0x263   : > { %1147 = vmatmul.msk.bf16.vlgmr.msra.gmra.mxu1 %vm442_vm6, %v1271_v57 }
 0x26a   : > { %v1272_v58 = vpop.trf.xlu1 }
 0x26b   : > { %1148 = vmatmul.msk.bf16.vlgmr.msra.gmra.mxu2 %vm442_vm6, %v1272_v58 }
 0x272   : > { %v1274_v59 = vpop.trf.xlu1 }
 0x273   : > { %1149 = vmatmul.msk.bf16.vlgmr.msrb.gmra.mxu3 %vm442_vm6, %v1274_v59 }
 0x27a   : > { %v1275_v60 = vpop.trf.xlu1 }
 0x27b   : > { %1150 = vmatmul.msk.bf16.vlgmr.msrb.gmra.mxu1 %vm442_vm6, %v1275_v60 }
 0x2e0   : > { %v459_v62 = vpop.f32.mrf.mxu1 }
 0x2e1   : > { %v568_v63 = vmul.f32 0.35355338, %v459_v62 }
 0x2e3   : > { %v572_v1 = vsel %vm442_vm6, %v568_v63, -inf }
 0x2e4   : > { %573 = vmax.xlane.f32.xlu2 %v572_v1 }
 0x2e8   : > { %v461_v2 = vpop.f32.mrf.mxu1 }
 0x2ee   : > { %v494_v4 = vpop.f32.mrf.mxu2 }
 0x2ef   : > { %v569_v5 = vmul.f32 0.35355338, %v494_v4 }
 0x2f1   : > { %v575_v6 = vsel %vm442_vm6, %v569_v5, -inf }
 0x2f2   : > { %576 = vmax.xlane.f32.xlu2 %v575_v6 }
 0x2f6   : > { %v496_v7 = vpop.f32.mrf.mxu2  ;;  %v529_v9 = vpop.f32.mrf.mxu3 }
 0x2f7   : > { %v570_v10 = vmul.f32 0.35355338, %v529_v9  ;;  %v748_v7 = vlaneseq }
 0x2f8   : > { %v564_v11 = vpop.f32.mrf.mxu1 }
 0x2f9   : > { %v571_v12 = vmul.f32 0.35355338, %v564_v11  ;;  %v578_v13 = vsel %vm442_vm6, %v570_v10, -inf }
 0x2fa   : > { %579 = vmax.xlane.f32.xlu2 %v578_v13  ;;  %v1216_v13 = vld [vmem:[%s1641_s2] sm:$0xff] }
 0x2fb   : > { %v581_v14 = vsel %vm442_vm6, %v571_v12, -inf }
 0x2fc   : > { %582 = vmax.xlane.f32.xlu0 %v581_v14 }
 0x2fe   : > { %v531_v15 = vpop.f32.mrf.mxu3 }
 0x300   : > { %v566_v16 = vpop.f32.mrf.mxu1 }
 0x357   : > { %v574_v17 = vpop.xlane.xlu2 %573 }
 0x358   : > { %v584_v18 = vsub.f32 %v568_v63, %v574_v17 }
 0x35a   : > { %v588_v19 = vmul.f32 1.442695, %v584_v18 }
 0x35c   : > { %1281 = vpow2.f32 %v588_v19 }
 0x362   : > { %v1282_v20 = vpop.eup %1281 }
 0x363   : > { %v596_v21 = vsel %vm442_vm6, %v1282_v20, 0.0  ;;  %v664_v23 = vpack.c.bf16 %v1282_v20, %v1282_v20  ;;  %v749_v20 = vand.u32 127, %v748_v7  ;;  %v1219_v7 = vld [vmem:[%s1642_s3 + $0x8] sm:$0xff] }
 0x364   : > { %597 = vadd.xlane.f32.xlu0 %v596_v21 }
 0x365   : > { %v577_v24 = vpop.xlane.xlu2 %576  ;;  %v672_v25 = vsel %vm442_vm6, %v664_v23, 0 }
 0x366   : > { %v585_v26 = vsub.f32 %v569_v5, %v577_v24  ;;  %681 = vmatpush.bf16.xpose.msrb.mxu2 %v672_v25 }
 0x368   : > { %v590_v27 = vmul.f32 1.442695, %v585_v26 }
 0x36a   : > { %1283 = vpow2.f32 %v590_v27 }
 0x36d   : > { %v580_v30 = vpop.xlane.xlu2 %579  ;;  %1151 = vmatmul.msk.bf16.vlgmr.msrb.gmra.mxu2 %vm442_vm6, %v422_v29 }
 0x36e   : > { %v586_v31 = vsub.f32 %v570_v10, %v580_v30 }
 0x36f   : > { %v583_v32 = vpop.xlane.xlu0 %582 }
 0x370   : > { %v1284_v33 = vpop.eup %1283  ;;  %v592_v34 = vmul.f32 1.442695, %v586_v31  ;;  %v587_v35 = vsub.f32 %v571_v12, %v583_v32 }
 0x371   : > { %v599_v36 = vsel %vm442_vm6, %v1284_v33, 0.0  ;;  %v665_v37 = vpack.c.bf16 %v1284_v33, %v1284_v33 }
 0x372   : > { %1285 = vpow2.f32 %v592_v34  ;;  %v594_v38 = vmul.f32 1.442695, %v587_v35  ;;  %600 = vadd.xlane.f32.xlu1 %v599_v36 }
 0x373   : > { %v691_v39 = vsel %vm442_vm6, %v665_v37, 0 }
 0x374   : > { %1287 = vpow2.f32 %v594_v38  ;;  %700 = vmatpush.bf16.xpose.msra.mxu3 %v691_v39 }
 0x378   : > { %v1286_v41 = vpop.eup %1285 }
 0x379   : > { %v602_v43 = vsel %vm442_vm6, %v1286_v41, 0.0  ;;  %v666_v44 = vpack.c.bf16 %v1286_v41, %v1286_v41 }
 0x37a   : > { %v1288_v45 = vpop.eup %1287  ;;  %603 = vadd.xlane.f32.xlu2 %v602_v43 }
 0x37b   : > { %1152 = vmatmul.msk.bf16.vlgmr.msra.gmra.mxu3 %vm442_vm6, %v423_v42  ;;  %v710_v46 = vsel %vm442_vm6, %v666_v44, 0  ;;  %v605_v47 = vsel %vm442_vm6, %v1288_v45, 0.0  ;;  %v667_v48 = vpack.c.bf16 %v1288_v45, %v1288_v45 }
 0x37c   : > { %719 = vmatpush.bf16.xpose.msra.mxu1 %v710_v46  ;;  %606 = vadd.xlane.f32.xlu0 %v605_v47 }
 0x37d   : > { %v729_v49 = vsel %vm442_vm6, %v667_v48, 0  ;;  %836 = vmatpush.bf16.msrb.mxu3 %v1217_v3 }
 0x37e   : > { %738 = vmatpush.bf16.xpose.msra.mxu2 %v729_v49 }
 0x381   : > { %837 = vmatpush.bf16.msrb.mxu3 %v1216_v13 }
 0x383   : > { %1153 = vmatmul.msk.bf16.vlgmr.msra.gmra.mxu1 %vm442_vm6, %v424_v50 }
 0x384   : > { %902 = vmatpush.bf16.msrb.mxu1 %v1219_v7 }
 0x385   : > { %1154 = vmatmul.msk.bf16.vlgmr.msra.gmra.mxu2 %vm442_vm6, %v425_v51 }
 0x3d7   : > { %v598_v52 = vpop.xlane.xlu0 %597 }
 0x3d8   : > { %1289 = vrcp.f32 %v598_v52  ;;  %vm613_vm9 = vweird.f32 %v598_v52  ;;  %v619_v6 = vand.u32 2147483648, %v598_v52  ;;  %v617_v12 = vand.u32 2147483647, %v598_v52 }
 0x3da   : > { %v620_v19 = vor.u32 1.1754944e-38, %v619_v6  ;;  %vm618_vm13 = vcmp.eq.f32.partialorder %v617_v12, 8.507059e+37 }
 0x3de   : > { %v1290_v53 = vpop.eup %1289 }
 0x3df   : > { %v609_v55 = vmul.f32 %v1290_v53, %v598_v52  ;;  %vm614_vm7 = vweird.f32 %v1290_v53 }
 0x3e0   : > { %vm1539_vm11 = vmor %vm613_vm9, %vm614_vm7 }
 0x3e1   : > { %v610_v56 = vsub.f32 1.0, %v609_v55 }
 0x3e3   : > { %v611_v60 = vmul.f32 %v1290_v53, %v610_v56 }
 0x3e5   : > { %v601_v54 = vpop.xlane.xlu1 %600  ;;  %v612_v1 = vadd.f32 %v1290_v53, %v611_v60 }
 0x3e6   : > { %1291 = vrcp.f32 %v601_v54  ;;  %v633_v5 = vand.u32 2147483648, %v601_v54  ;;  %vm627_vm10 = vweird.f32 %v601_v54  ;;  %v631_v9 = vand.u32 2147483647, %v601_v54 }
 0x3e7   : > { %v616_v16 = vsel %vm1539_vm11, %v1290_v53, %v612_v1 }
 0x3e8   : > { %v634_v18 = vor.u32 1.1754944e-38, %v633_v5  ;;  %vm632_vm14 = vcmp.eq.f32.partialorder %v631_v9, 8.507059e+37  ;;  %v621_v25 = vsel %vm618_vm13, %v620_v19, %v616_v16  ;;  %v1218_v9 = vld [vmem:[%s1642_s3] sm:$0xff]  ;;  %v868_v19 = vperm.slane %v1468_v22, 3 }
 0x3e9   : > { %v750_v29 = vperm.slane %v621_v25, %v749_v20  ;;  %903 = vmatpush.bf16.msrb.mxu1 %v1218_v9 }
 0x3ec   : > { %v1292_v57 = vpop.eup %1291 }
 0x3ed   : > { %v623_v58 = vmul.f32 %v1292_v57, %v601_v54  ;;  %v1529_v59 = vpop.xlane.xlu2 %603  ;;  %vm628_vm8 = vweird.f32 %v1292_v57 }
 0x3ee   : > { %1293 = vrcp.f32 %v1529_v59  ;;  %vm629_vm12 = vmor %vm627_vm10, %vm628_vm8  ;;  %vm641_vm2 = vweird.f32 %v1529_v59  ;;  %v647_v38 = vand.u32 2147483648, %v1529_v59  ;;  %v645_v40 = vand.u32 2147483647, %v1529_v59 }
 0x3ef   : > { %v624_v61 = vsub.f32 1.0, %v623_v58  ;;  %v1532_v62 = vpop.xlane.xlu0 %606  ;;  %v798_v58 = vperm.slane %v1468_v22, 2 }
 0x3f0   : > { %1295 = vrcp.f32 %v1532_v62  ;;  %v683_v63 = vpop.f32.mrf.mxu2  ;;  %v661_v39 = vand.u32 2147483648, %v1532_v62  ;;  %vm655_vm3 = vweird.f32 %v1532_v62  ;;  %v659_v41 = vand.u32 2147483647, %v1532_v62 }
 0x3f1   : > { %v625_v0 = vmul.f32 %v1292_v57, %v624_v61  ;;  %v788_v32 = vmul.f32 %v750_v29, %v683_v63  ;;  %v648_v44 = vor.u32 1.1754944e-38, %v647_v38  ;;  %vm646_vm6 = vcmp.eq.f32.partialorder %v645_v40, 8.507059e+37 }
 0x3f2   : > { %v662_v46 = vor.u32 1.1754944e-38, %v661_v39  ;;  %vm660_vm7 = vcmp.eq.f32.partialorder %v659_v41, 8.507059e+37 }
 0x3f3   : > { %v626_v2 = vadd.f32 %v1292_v57, %v625_v0 }
 0x3f4   : > { %v1294_v4 = vpop.eup %1293 }
 0x3f5   : > { %v637_v10 = vmul.f32 %v1294_v4, %v1529_v59  ;;  %v630_v17 = vsel %vm629_vm12, %v1292_v57, %v626_v2  ;;  %vm642_vm15 = vweird.f32 %v1294_v4  ;;  %v843_v59 = vperm.slane %v1468_v22, 6 }
 0x3f6   : > { %v1296_v14 = vpop.eup %1295  ;;  %v635_v26 = vsel %vm632_vm14, %v634_v18, %v630_v17  ;;  %vm643_vm4 = vmor %vm641_vm2, %vm642_vm15 }
 0x3f7   : > { %v651_v15 = vmul.f32 %v1296_v14, %v1532_v62  ;;  %v638_v23 = vsub.f32 1.0, %v637_v10  ;;  %v751_v30 = vperm.slane %v635_v26, %v749_v20  ;;  %vm656_vm1 = vweird.f32 %v1296_v14  ;;  %v1227_v26 = vld [vmem:[%s1644_s5 + $0x38] sm:$0xff] }
 0x3f8   : > { %v685_v21 = vpop.f32.mrf.mxu2  ;;  %vm657_vm5 = vmor %vm655_vm3, %vm656_vm1  ;;  %1019 = vmatpush.bf16.msrb.mxu2 %v1227_v26 }
 0x3f9   : > { %v652_v24 = vsub.f32 1.0, %v651_v15  ;;  %v639_v27 = vmul.f32 %v1294_v4, %v638_v23  ;;  %v870_v23 = vperm.slane %v1468_v22, 4 }
 0x3fb   : > { %v653_v28 = vmul.f32 %v1296_v14, %v652_v24  ;;  %v640_v35 = vadd.f32 %v1294_v4, %v639_v27  ;;  %v1226_v27 = vld [vmem:[%s1644_s5 + $0x30] sm:$0xff] }
 0x3fc   : > { %1020 = vmatpush.bf16.msrb.mxu2 %v1226_v27 }
 0x3fd   : > { %v654_v37 = vadd.f32 %v1296_v14, %v653_v28  ;;  %v644_v42 = vsel %vm643_vm4, %v1294_v4, %v640_v35  ;;  %v1276_v28 = vld [vmem:[%s1643_s4] ss:$0 sm:$0xff] }
 0x3fe   : > { %v702_v31 = vpop.f32.mrf.mxu3  ;;  %v649_v47 = vsel %vm646_vm6, %v648_v44, %v644_v42  ;;  %v1222_v42 = vld [vmem:[%s1644_s5 + $0x10] sm:$0xff] }
 0x3ff   : > { %v789_v33 = vmul.f32 %v751_v30, %v702_v31  ;;  %v658_v43 = vsel %vm657_vm5, %v1296_v14, %v654_v37  ;;  %v752_v51 = vperm.slane %v649_v47, %v749_v20  ;;  %v1225_v30 = vld [vmem:[%s1644_s5 + $0x28] sm:$0xff]  ;;  %v1223_v37 = vld [vmem:[%s1644_s5 + $0x18] sm:$0xff] }
 0x400   : > { %v721_v34 = vpop.f32.mrf.mxu1  ;;  %v663_v49 = vsel %vm660_vm7, %v662_v46, %v658_v43  ;;  %1021 = vmatpush.bf16.msrb.mxu2 %v1225_v30  ;;  %v1221_v47 = vld [vmem:[%s1644_s5 + $0x8] sm:$0xff] }
 0x401   : > { %v792_v36 = vpack.c.bf16 %v789_v33, %v788_v32  ;;  %v753_v52 = vperm.slane %v663_v49, %v749_v20  ;;  %v790_v54 = vmul.f32 %v752_v51, %v721_v34  ;;  %v1224_v33 = vld [vmem:[%s1644_s5 + $0x20] sm:$0xff] }
 0x402   : > { %v1220_v51 = vld [vmem:[%s1644_s5] sm:$0xff] }
 0x403   : > { %799 = vxpose.xlu2.c.b16.start [1/2] (short) (narrow) %v792_v36, 16 }
 0x404   : > { %1022 = vmatpush.bf16.msrb.mxu2 %v1224_v33 }
 0x406   : > { %v704_v45 = vpop.f32.mrf.mxu3 }
 0x408   : > { %v723_v48 = vpop.f32.mrf.mxu1  ;;  %v740_v50 = vpop.f32.mrf.mxu2  ;;  %1023 = vmatpush.bf16.msrb.mxu2 %v1223_v37 }
 0x409   : > { %v791_v53 = vmul.f32 %v753_v52, %v740_v50 }
 0x40b   : > { %v793_v56 = vpack.c.bf16 %v791_v53, %v790_v54 }
 0x40c   : > { %1024 = vmatpush.bf16.msrb.mxu2 %v1222_v42 }
 0x410   : > { %v742_v55 = vpop.f32.mrf.mxu2  ;;  %1025 = vmatpush.bf16.msrb.mxu2 %v1221_v47 }
 0x413   : > { %800 = vxpose.xlu2.c.b16.end [2/2] (short) (narrow) %v793_v56, 16 }
 0x414   : > { %1026 = vmatpush.bf16.msrb.mxu2 %v1220_v51 }
 0x4a4   : > { %v807_v57 = vpop.trf.xlu2 }
 0x4a5   : > { %1163 = vmatmul.msk.bf16.vlgmr.msrb.gmra.mxu3 %vm277_vm0, %v807_v57 }
 0x528   : > { %v839_v60 = vpop.f32.mrf.mxu3 }
 0x529   : > { %v840_v61 = vadd.f32 %v839_v60, %v798_v58 }
 0x52b   : > { %v844_v62 = vmul.f32 %v843_v59, %v840_v61 }
 0x52d   : > { %v1559_v63 = vadd.f32 %v844_v62, %v840_v61 }
 0x52f   : > { %v846_v0 = vsel %vm277_vm0, %v1559_v63, 0.0 }
 0x530   : > { %847 = vadd.xlane.f32.xlu0 %v846_v0  ;;  %v841_v1 = vpop.f32.mrf.mxu3 }
 0x5a3   : > { %v848_v2 = vpop.xlane.xlu0 %847 }
 0x5a4   : > { %v849_v3 = vmul.f32 %v848_v2, %v1460_v8 }
 0x5a6   : > { %v850_v4 = vsub.f32 %v1559_v63, %v849_v3 }
 0x5a8   : > { %v851_v5 = vmul.f32 %v850_v4, %v850_v4 }
 0x5aa   : > { %v852_v6 = vsel %vm277_vm0, %v851_v5, 0.0 }
 0x5ab   : > { %853 = vadd.xlane.f32.xlu0 %v852_v6 }
 0x61e   : > { %v854_v10 = vpop.xlane.xlu0 %853 }
 0x61f   : > { %v855_v11 = vmul.f32 %v854_v10, %v1460_v8 }
 0x621   : > { %v856_v12 = vadd.f32 1e-05, %v855_v11 }
 0x623   : > { %1297 = vrsqrt.f32 %v856_v12  ;;  %vm863_vm9 = vweird.f32 %v856_v12 }
 0x629   : > { %v1298_v13 = vpop.eup %1297 }
 0x62a   : > { %v858_v14 = vmul.f32 %v1298_v13, %v856_v12  ;;  %vm864_vm8 = vweird.f32 %v1298_v13 }
 0x62b   : > { %vm865_vm10 = vmor %vm863_vm9, %vm864_vm8 }
 0x62c   : > { %v859_v15 = vmul.f32 %v1298_v13, %v858_v14 }
 0x62e   : > { %v860_v16 = vmul.f32 0.5, %v859_v15 }
 0x630   : > { %v861_v17 = vsub.f32 1.5, %v860_v16  ;;  %v970_v16 = vperm.slane %v1468_v22, 5 }
 0x632   : > { %v862_v18 = vmul.f32 %v1298_v13, %v861_v17  ;;  %v1032_v17 = vperm.slane %v1468_v22, 7 }
 0x634   : > { %v866_v20 = vsel %vm865_vm10, %v1298_v13, %v862_v18 }
 0x635   : > { %v867_v21 = vmul.f32 %v866_v20, %v850_v4 }
 0x637   : > { %v869_v24 = vmul.f32 %v868_v19, %v867_v21 }
 0x639   : > { %v871_v25 = vadd.f32 %v870_v23, %v869_v24 }
 0x63b   : > { %v872_v8 = vpack.c.bf16 %v871_v25, %v871_v25 }
 0x63d   : > { %1172 = vmatmul.msk.bf16.vlgmr.msrb.gmra.mxu1 %vm277_vm0, %v872_v8 }
 0x6ba   : > { %v905_v29 = vpop.f32.mrf.mxu1 }
 0x6bb   : > { %v906_v31 = vadd.f32 %v1276_v28, %v905_v29 }
 0x6bd   : > { %v910_v32 = vmul.f32 0.70710677, %v906_v31  ;;  %v909_v12 = vmul.f32 0.5, %v906_v31 }
 0x6bf   : > { %v911_v34 = vmul.f32 %v910_v32, %v910_v32 }
 0x6c1   : > { %v912_v35 = vmin.f32 %v911_v34, 16.0 }
 0x6c2   : > { %v907_v36 = vpop.f32.mrf.mxu1 }
 0x6c3   : > { %v913_v38 = vmul.f32 2.1237322e-06, %v912_v35  ;;  %v924_v39 = vmul.f32 3.8918573e-05, %v912_v35 }
 0x6c5   : > { %v914_v40 = vadd.f32 0.00028619796, %v913_v38  ;;  %v925_v41 = vadd.f32 0.001143296, %v924_v39 }
 0x6c7   : > { %v915_v43 = vmul.f32 %v914_v40, %v912_v35  ;;  %v926_v44 = vmul.f32 %v925_v41, %v912_v35 }
 0x6c9   : > { %v927_v45 = vadd.f32 0.014752088, %v926_v44  ;;  %v916_v46 = vadd.f32 0.0036580483, %v915_v43 }
 0x6cb   : > { %v928_v48 = vmul.f32 %v927_v45, %v912_v35  ;;  %v917_v50 = vmul.f32 %v916_v46, %v912_v35 }
 0x6cd   : > { %v929_v49 = vadd.f32 0.112945676, %v928_v48  ;;  %v918_v54 = vadd.f32 0.05243302, %v917_v50 }
 0x6cf   : > { %v930_v52 = vmul.f32 %v929_v49, %v912_v35  ;;  %v919_v57 = vmul.f32 %v918_v54, %v912_v35 }
 0x6d1   : > { %v931_v53 = vadd.f32 0.4994258, %v930_v52  ;;  %v920_v58 = vadd.f32 0.18741608, %v919_v57 }
 0x6d3   : > { %v932_v55 = vmul.f32 %v931_v53, %v912_v35  ;;  %v921_v60 = vmul.f32 %v920_v58, %v912_v35 }
 0x6d5   : > { %v933_v56 = vadd.f32 1.0, %v932_v55  ;;  %v922_v1 = vadd.f32 1.1283791, %v921_v60 }
 0x6d7   : > { %1299 = vrcp.f32 %v933_v56  ;;  %v945_v0 = vand.u32 2147483648, %v933_v56  ;;  %v943_v3 = vand.u32 2147483647, %v933_v56  ;;  %vm939_vm12 = vweird.f32 %v933_v56 }
 0x6d8   : > { %v923_v6 = vmul.f32 %v922_v1, %v910_v32 }
 0x6d9   : > { %v946_v5 = vor.u32 1.1754944e-38, %v945_v0  ;;  %vm944_vm14 = vcmp.eq.f32.partialorder %v943_v3, 8.507059e+37 }
 0x6dd   : > { %v1300_v59 = vpop.eup %1299 }
 0x6de   : > { %v935_v61 = vmul.f32 %v1300_v59, %v933_v56  ;;  %vm940_vm11 = vweird.f32 %v1300_v59 }
 0x6df   : > { %vm941_vm13 = vmor %vm939_vm12, %vm940_vm11 }
 0x6e0   : > { %v936_v62 = vsub.f32 1.0, %v935_v61 }
 0x6e2   : > { %v937_v2 = vmul.f32 %v1300_v59, %v936_v62 }
 0x6e4   : > { %v938_v4 = vadd.f32 %v1300_v59, %v937_v2 }
 0x6e6   : > { %v942_v7 = vsel %vm941_vm13, %v1300_v59, %v938_v4 }
 0x6e7   : > { %v947_v9 = vsel %vm944_vm14, %v946_v5, %v942_v7 }
 0x6e8   : > { %v948_v10 = vmul.f32 %v947_v9, %v923_v6 }
 0x6ea   : > { %v1173_v11 = vclamps-f32 %v948_v10, 1.0 }
 0x6ec   : > { %v951_v13 = vadd.f32 1.0, %v1173_v11 }
 0x6ee   : > { %v952_v14 = vmul.f32 %v951_v13, %v909_v12 }
 0x6f0   : > { %v953_v15 = vpack.c.bf16 %v952_v14, %v952_v14 }
 0x6f2   : > { %1027 = vmatmul.bf16.vlgmr.msrb.gmra.mxu2 %v953_v15 }
 0x775   : > { %v1028_v18 = vpop.f32.mrf.mxu2 }
 0x776   : > { %v1029_v19 = vadd.f32 %v1028_v18, %v970_v16 }
 0x778   : > { %v1033_v20 = vmul.f32 %v1032_v17, %v1029_v19 }
 0x77a   : > { %v1034_v21 = vadd.f32 %v1033_v20, %v1559_v63 }
 0x77c   : > { %1035 = vst.msk [vmem:[%s269_s22] sm:$0xff] %vm277_vm0, %v1034_v21 }
 0x77d   : > { %v1030_v23 = vpop.f32.mrf.mxu2 }
 0x77e   : > { %1328 = shalt.err (!%p1325_p3)
}
 0x77f   : > { %1229 = dma.vmem_to_hbm [thread:$0]  (%p1444_p5), %s1050_s23, 128, %s1052_s29, %s1037_s28  }
 0x780 PF: > { %p1235_p4 = scmp.ge.s32.totalorder %s1363_s27, 2  ;;  %s1063_s16 = sand.u32 1, %s1351_s24  }
 0x781   : > { %s1064_s19 = scalar_lea.sflag [#allocation3], %s1063_s16 }
 0x782   : > { %p1232_p7 = pnand %p1235_p4, %p1448_p6 }
 0x784   : > { %p1233_p8 = pneg %p1232_p7 }
 0x786   : > { %1346 = dma.done.wait (%p1233_p8), %s1064_s19, 128  }
 0x787   : > { %1348 = vsyncadd (%p1233_p8), %s1064_s19, 4294967168  ;;  %p17_p9 = scmp.ge.s32.totalorder %s1431_s30, 4   ;;  %s1651_s24 = smov %s1355_s25 }
 0x788   : > { %s1652_s25 = smov %s1359_s26  ;;  %s1653_s26 = smov %s1442_s10 }
 0x789   : > { %s1654_s27 = smov %s1431_s30  ;;  %19 = sbr.rel (!%p17_p9) target bundleno = 3 (0x3), region = 83 }
 0x78e   :  { %1070 = vsyncpa [#allocation3], 1 }
 0x78f   :  { %1072 = vsyncpa [#allocation3 + $0x1], 1 }

</bundles_post_ra>
